<compile_context>
chip_gen: v5e
topology: v5e:2x2
jax: 0.10.0
libtpu: 0.0.40
codegen_flags: <defaults>
</compile_context>

<pallas_src>
import functools
import math

import jax
import jax.numpy as jnp
from jax import lax
from jax.experimental import pallas as pl
from jax.experimental.pallas import tpu as pltpu


def mha_kernel(x_ref, wqkv_ref, bqkv_ref, wo_ref, bo_ref, o_ref, *,
               num_heads, head_dim, seq_len):
    """Grid = (batch,).

    x_ref    : (1, S_pad, H)   input tokens (native dtype)
    wqkv_ref : (H, 3H)         merged [Wq | Wk | Wv] (resident in VMEM)
    bqkv_ref : (1, 3H)         merged qkv bias
    wo_ref   : (H, H)          output projection weight (resident in VMEM)
    bo_ref   : (1, H)          output projection bias
    o_ref    : (1, S_pad, H)   attention output
    """
    s_pad = x_ref.shape[1]
    hidden = num_heads * head_dim

    x = x_ref[0]                                            # (S_pad, H)

    # Merged QKV projection on the MXU, f32 accumulation.
    qkv = jnp.dot(x, wqkv_ref[...], preferred_element_type=jnp.float32)
    qkv = qkv + bqkv_ref[...].astype(jnp.float32)           # (S_pad, 3H) f32

    # Fold 1/sqrt(D) into q (scales (S, H) instead of per-head (S, S)).
    scale = 1.0 / math.sqrt(head_dim)
    q = (qkv[:, 0 * hidden:1 * hidden] * scale).astype(x.dtype)
    k = qkv[:, 1 * hidden:2 * hidden].astype(x.dtype)
    v = qkv[:, 2 * hidden:3 * hidden].astype(x.dtype)

    # Key-padding mask, hoisted out of the head loop (static decision).
    if seq_len < s_pad:
        key_valid = lax.broadcasted_iota(jnp.int32, (1, s_pad), 1) < seq_len
    else:
        key_valid = None

    ctx_heads = []
    for h in range(num_heads):                              # small, static
        lo = h * head_dim
        qh = q[:, lo:lo + head_dim]                         # (S_pad, D)
        kh = k[:, lo:lo + head_dim]
        vh = v[:, lo:lo + head_dim]

        # Contract on the last dim of both operands (no kh.T materialized).
        scores = lax.dot_general(
            qh, kh, (((1,), (1,)), ((), ())),
            preferred_element_type=jnp.float32)             # (S_pad, S_pad) f32
        if key_valid is not None:
            scores = jnp.where(key_valid, scores, -jnp.inf)

        # Numerically stable softmax in f32; normalization is deferred to the
        # (S, D) context instead of scaling the (S, S) probability matrix.
        scores = scores - jnp.max(scores, axis=-1, keepdims=True)
        p = jnp.exp(scores)                                 # values in (0, 1]
        inv_l = pl.reciprocal(jnp.sum(p, axis=-1, keepdims=True), approx=True)
        ctx_h = jnp.dot(p.astype(vh.dtype), vh,
                        preferred_element_type=jnp.float32) * inv_l
        ctx_heads.append(ctx_h.astype(x.dtype))

    # Lane-dense (S_pad, H) context; single K=H output projection.
    ctx = jnp.concatenate(ctx_heads, axis=-1)
    out = jnp.dot(ctx, wo_ref[...], preferred_element_type=jnp.float32)
    o_ref[0] = (out + bo_ref[...].astype(jnp.float32)).astype(o_ref.dtype)


def _round_up(n, m):
    return ((n + m - 1) // m) * m


def faster_multi_head_attention(x, w_qkv, b_qkv, w_out, b_out, *, num_heads):
    """x: (B, S, H); returns (B, S, H)."""
    B, S, H = x.shape
    assert H % num_heads == 0
    D = H // num_heads

    # Pad S for sublane/lane alignment (ViT: 197 -> 256).  Padded key columns
    # are masked inside the kernel; padded query rows are sliced off below.
    sublane = 16 if x.dtype == jnp.bfloat16 else 8
    s_pad = _round_up(S, 128) if S > 128 else _round_up(S, sublane)
    x_in = jnp.pad(x, ((0, 0), (0, s_pad - S), (0, 0))) if s_pad != S else x

    # Feed the MXU in the activation dtype (bf16 in production); accumulation
    # inside the kernel is f32.
    w_qkv_in = w_qkv.astype(x.dtype)
    w_out_in = w_out.astype(x.dtype)
    b_qkv_in = b_qkv.reshape(1, 3 * H).astype(jnp.float32)
    b_out_in = b_out.reshape(1, H).astype(jnp.float32)

    kernel = functools.partial(mha_kernel, num_heads=num_heads, head_dim=D,
                               seq_len=S)

    out = pl.pallas_call(
        kernel,
        out_shape=jax.ShapeDtypeStruct((B, s_pad, H), x.dtype),
        grid=(B,),
        in_specs=[
            pl.BlockSpec((1, s_pad, H), lambda b: (b, 0, 0)),   # x (per batch)
            pl.BlockSpec((H, 3 * H), lambda b: (0, 0)),         # W_qkv (resident)
            pl.BlockSpec((1, 3 * H), lambda b: (0, 0)),         # b_qkv (resident)
            pl.BlockSpec((H, H), lambda b: (0, 0)),             # W_out (resident)
            pl.BlockSpec((1, H), lambda b: (0, 0)),              # b_out (resident)
        ],
        out_specs=pl.BlockSpec((1, s_pad, H), lambda b: (b, 0, 0)),
        compiler_params=pltpu.CompilerParams(
            dimension_semantics=("parallel",),
            # Below v7x's 64 MiB physical VMEM; ample for ViT-scale weights.
            vmem_limit_bytes=48 * 1024 * 1024),
    )(x_in, w_qkv_in, b_qkv_in, w_out_in, b_out_in)

    if s_pad != S:
        out = out[:, :S, :]
    return out


def reference_mha(x, w_qkv, b_qkv, w_out, b_out, *, num_heads):
    """Plain-JAX f32 reference replicating the PyTorch forward (eval mode)."""
    x = x.astype(jnp.float32)
    w_qkv = w_qkv.astype(jnp.float32)
    b_qkv = b_qkv.astype(jnp.float32)
    w_out = w_out.astype(jnp.float32)
    b_out = b_out.astype(jnp.float32)

    B, S, H = x.shape
    D = H // num_heads
    qkv = x @ w_qkv + b_qkv                               # (B, S, 3H)
    q, k, v = jnp.split(qkv, 3, axis=-1)

    def split_heads(t):
        return t.reshape(B, S, num_heads, D).transpose(0, 2, 1, 3)

    q, k, v = split_heads(q), split_heads(k), split_heads(v)
    scores = jnp.einsum("bhqd,bhkd->bhqk", q, k) / math.sqrt(D)
    probs = jax.nn.softmax(scores, axis=-1)
    ctx = jnp.einsum("bhqk,bhkd->bhqd", probs, v)
    ctx = ctx.transpose(0, 2, 1, 3).reshape(B, S, H)
    return ctx @ w_out + b_out


def _make_params(key, hidden):
    kw1, kb1, kw2, kb2 = jax.random.split(key, 4)
    w_qkv = jax.random.normal(kw1, (hidden, 3 * hidden),
                              jnp.float32) * (1.0 / math.sqrt(hidden))
    b_qkv = jax.random.normal(kb1, (3 * hidden,), jnp.float32) * 0.02
    w_out = jax.random.normal(kw2, (hidden, hidden),
                              jnp.float32) * (1.0 / math.sqrt(hidden))
    b_out = jax.random.normal(kb2, (hidden,), jnp.float32) * 0.02
    return w_qkv, b_qkv, w_out, b_out


def _check(key, batch, seq, hidden, heads, dtype=jnp.float32,
           atol=2e-2, rtol=2e-2):
    kx, kp = jax.random.split(key)
    x = jax.random.normal(kx, (batch, seq, hidden), jnp.float32).astype(dtype)
    w_qkv, b_qkv, w_out, b_out = _make_params(kp, hidden)

    out = faster_multi_head_attention(
        x, w_qkv, b_qkv, w_out, b_out, num_heads=heads)
    out = jax.block_until_ready(out)

    ref = reference_mha(x, w_qkv, b_qkv, w_out, b_out, num_heads=heads)
    assert out.shape == (batch, seq, hidden)
    err = jnp.max(jnp.abs(out.astype(jnp.float32) - ref))
    # Tolerances cover the EUP approximate reciprocal and (for bf16 runs) the
    # bf16 rounding of the MXU operands vs the f32 reference.
    assert jnp.allclose(out.astype(jnp.float32), ref, atol=atol, rtol=rtol), (
        f"max abs err = {err}")


if __name__ == "__main__":
    key = jax.random.PRNGKey(0)
    k1, k2, k3 = jax.random.split(key, 3)

    # Toy config consistent with the module: hidden=32, 4 heads, seq=16, f32.
    _check(k1, batch=2, seq=16, hidden=32, heads=4)

    # ViT-like sequence length 197 -> padded to 256; exercises key masking.
    _check(k2, batch=2, seq=197, hidden=256, heads=4)

    # bf16 activations/weights (production dtype); pad 60 -> 64 sublanes.
    _check(k3, batch=1, seq=60, hidden=128, heads=2,
           dtype=jnp.bfloat16, atol=2e-1, rtol=1e-1)

    print("KERNEL_OK")
</pallas_src>

<mosaic_0001>
module attributes {stable_mosaic.version = 11 : i64} {
  func.func @mha_kernel(%arg0: i32, %arg1: memref<1x16x32xf32, #tpu.memory_space<vmem>>, %arg2: memref<32x96xf32, #tpu.memory_space<vmem>>, %arg3: memref<1x96xf32, #tpu.memory_space<vmem>>, %arg4: memref<32x32xf32, #tpu.memory_space<vmem>>, %arg5: memref<1x32xf32, #tpu.memory_space<vmem>>, %arg6: memref<1x16x32xf32, #tpu.memory_space<vmem>>) attributes {dimension_semantics = [#tpu.dimension_semantics<parallel>], iteration_bounds = array<i64: 2>, scalar_prefetch = 0 : i64, scratch_operands = 0 : i64, tpu.core_type = #tpu.core_type<tc>, window_params = [{transform_indices = @transform_0, window_bounds = array<i64: 1, 16, 32>}, {pipeline_mode = #tpu.pipeline_mode<synchronous>, transform_indices = @transform_1, window_bounds = array<i64: 32, 96>}, {pipeline_mode = #tpu.pipeline_mode<synchronous>, transform_indices = @transform_2, window_bounds = array<i64: 1, 96>}, {pipeline_mode = #tpu.pipeline_mode<synchronous>, transform_indices = @transform_3, window_bounds = array<i64: 32, 32>}, {pipeline_mode = #tpu.pipeline_mode<synchronous>, transform_indices = @transform_4, window_bounds = array<i64: 1, 32>}, {transform_indices = @transform_5, window_bounds = array<i64: 1, 16, 32>}]} {
    %c0 = arith.constant 0 : index
    %c0_0 = arith.constant 0 : index
    %c0_1 = arith.constant 0 : index
    %0 = vector.load %arg1[%c0, %c0_0, %c0_1] : memref<1x16x32xf32, #tpu.memory_space<vmem>>, vector<1x16x32xf32>
    %1 = vector.shape_cast %0 : vector<1x16x32xf32> to vector<16x32xf32>
    %c0_2 = arith.constant 0 : index
    %c0_3 = arith.constant 0 : index
    %2 = vector.load %arg2[%c0_2, %c0_3] : memref<32x96xf32, #tpu.memory_space<vmem>>, vector<32x96xf32>
    %cst = arith.constant dense<0.000000e+00> : vector<16x96xf32>
    %3 = tpu.matmul %1, %2, %cst {dimension_numbers = #tpu.dot_dimension_numbers<[1], [0], [0], [1], [0, 0, 1, 1], [], []>} : vector<16x32xf32>, vector<32x96xf32>, vector<16x96xf32> -> vector<16x96xf32>
    %c0_4 = arith.constant 0 : index
    %c0_5 = arith.constant 0 : index
    %4 = vector.load %arg3[%c0_4, %c0_5] : memref<1x96xf32, #tpu.memory_space<vmem>>, vector<1x96xf32>
    %5 = vector.broadcast %4 : vector<1x96xf32> to vector<16x96xf32>
    %6 = arith.addf %3, %5 : vector<16x96xf32>
    %7 = vector.extract_strided_slice %6 {offsets = [0, 0], sizes = [16, 32], strides = [1, 1]} : vector<16x96xf32> to vector<16x32xf32>
    %cst_6 = arith.constant 0.353553385 : f32
    %8 = vector.broadcast %cst_6 : f32 to vector<16x32xf32>
    %9 = arith.mulf %7, %8 : vector<16x32xf32>
    %10 = vector.extract_strided_slice %6 {offsets = [0, 32], sizes = [16, 32], strides = [1, 1]} : vector<16x96xf32> to vector<16x32xf32>
    %11 = vector.extract_strided_slice %6 {offsets = [0, 64], sizes = [16, 32], strides = [1, 1]} : vector<16x96xf32> to vector<16x32xf32>
    %12 = vector.extract_strided_slice %9 {offsets = [0, 0], sizes = [16, 8], strides = [1, 1]} : vector<16x32xf32> to vector<16x8xf32>
    %13 = vector.extract_strided_slice %10 {offsets = [0, 0], sizes = [16, 8], strides = [1, 1]} : vector<16x32xf32> to vector<16x8xf32>
    %14 = vector.extract_strided_slice %11 {offsets = [0, 0], sizes = [16, 8], strides = [1, 1]} : vector<16x32xf32> to vector<16x8xf32>
    %cst_7 = arith.constant dense<0.000000e+00> : vector<16x16xf32>
    %15 = tpu.matmul %12, %13, %cst_7 {dimension_numbers = #tpu.dot_dimension_numbers<[1], [1], [0], [0], [0, 0, 1, 0], [], []>} : vector<16x8xf32>, vector<16x8xf32>, vector<16x16xf32> -> vector<16x16xf32>
    %cst_8 = arith.constant dense<0xFF800000> : vector<16xf32>
    %16 = vector.multi_reduction <maximumf>, %15, %cst_8 [1] : vector<16x16xf32> to vector<16xf32>
    %17 = vector.shape_cast %16 : vector<16xf32> to vector<16x1xf32>
    %18 = vector.broadcast %17 : vector<16x1xf32> to vector<16x16xf32>
    %19 = arith.subf %15, %18 : vector<16x16xf32>
    %20 = math.exp %19 : vector<16x16xf32>
    %cst_9 = arith.constant dense<0.000000e+00> : vector<16xf32>
    %21 = vector.multi_reduction <add>, %20, %cst_9 [1] : vector<16x16xf32> to vector<16xf32>
    %22 = vector.shape_cast %21 : vector<16xf32> to vector<16x1xf32>
    %23 = tpu.reciprocal %22 {approx = true} : vector<16x1xf32> -> vector<16x1xf32>
    %cst_10 = arith.constant dense<0.000000e+00> : vector<16x8xf32>
    %24 = tpu.matmul %20, %14, %cst_10 {dimension_numbers = #tpu.dot_dimension_numbers<[1], [0], [0], [1], [0, 0, 1, 1], [], []>} : vector<16x16xf32>, vector<16x8xf32>, vector<16x8xf32> -> vector<16x8xf32>
    %25 = vector.broadcast %23 : vector<16x1xf32> to vector<16x8xf32>
    %26 = arith.mulf %24, %25 : vector<16x8xf32>
    %27 = vector.extract_strided_slice %9 {offsets = [0, 8], sizes = [16, 8], strides = [1, 1]} : vector<16x32xf32> to vector<16x8xf32>
    %28 = vector.extract_strided_slice %10 {offsets = [0, 8], sizes = [16, 8], strides = [1, 1]} : vector<16x32xf32> to vector<16x8xf32>
    %29 = vector.extract_strided_slice %11 {offsets = [0, 8], sizes = [16, 8], strides = [1, 1]} : vector<16x32xf32> to vector<16x8xf32>
    %cst_11 = arith.constant dense<0.000000e+00> : vector<16x16xf32>
    %30 = tpu.matmul %27, %28, %cst_11 {dimension_numbers = #tpu.dot_dimension_numbers<[1], [1], [0], [0], [0, 0, 1, 0], [], []>} : vector<16x8xf32>, vector<16x8xf32>, vector<16x16xf32> -> vector<16x16xf32>
    %cst_12 = arith.constant dense<0xFF800000> : vector<16xf32>
    %31 = vector.multi_reduction <maximumf>, %30, %cst_12 [1] : vector<16x16xf32> to vector<16xf32>
    %32 = vector.shape_cast %31 : vector<16xf32> to vector<16x1xf32>
    %33 = vector.broadcast %32 : vector<16x1xf32> to vector<16x16xf32>
    %34 = arith.subf %30, %33 : vector<16x16xf32>
    %35 = math.exp %34 : vector<16x16xf32>
    %cst_13 = arith.constant dense<0.000000e+00> : vector<16xf32>
    %36 = vector.multi_reduction <add>, %35, %cst_13 [1] : vector<16x16xf32> to vector<16xf32>
    %37 = vector.shape_cast %36 : vector<16xf32> to vector<16x1xf32>
    %38 = tpu.reciprocal %37 {approx = true} : vector<16x1xf32> -> vector<16x1xf32>
    %cst_14 = arith.constant dense<0.000000e+00> : vector<16x8xf32>
    %39 = tpu.matmul %35, %29, %cst_14 {dimension_numbers = #tpu.dot_dimension_numbers<[1], [0], [0], [1], [0, 0, 1, 1], [], []>} : vector<16x16xf32>, vector<16x8xf32>, vector<16x8xf32> -> vector<16x8xf32>
    %40 = vector.broadcast %38 : vector<16x1xf32> to vector<16x8xf32>
    %41 = arith.mulf %39, %40 : vector<16x8xf32>
    %42 = vector.extract_strided_slice %9 {offsets = [0, 16], sizes = [16, 8], strides = [1, 1]} : vector<16x32xf32> to vector<16x8xf32>
    %43 = vector.extract_strided_slice %10 {offsets = [0, 16], sizes = [16, 8], strides = [1, 1]} : vector<16x32xf32> to vector<16x8xf32>
    %44 = vector.extract_strided_slice %11 {offsets = [0, 16], sizes = [16, 8], strides = [1, 1]} : vector<16x32xf32> to vector<16x8xf32>
    %cst_15 = arith.constant dense<0.000000e+00> : vector<16x16xf32>
    %45 = tpu.matmul %42, %43, %cst_15 {dimension_numbers = #tpu.dot_dimension_numbers<[1], [1], [0], [0], [0, 0, 1, 0], [], []>} : vector<16x8xf32>, vector<16x8xf32>, vector<16x16xf32> -> vector<16x16xf32>
    %cst_16 = arith.constant dense<0xFF800000> : vector<16xf32>
    %46 = vector.multi_reduction <maximumf>, %45, %cst_16 [1] : vector<16x16xf32> to vector<16xf32>
    %47 = vector.shape_cast %46 : vector<16xf32> to vector<16x1xf32>
    %48 = vector.broadcast %47 : vector<16x1xf32> to vector<16x16xf32>
    %49 = arith.subf %45, %48 : vector<16x16xf32>
    %50 = math.exp %49 : vector<16x16xf32>
    %cst_17 = arith.constant dense<0.000000e+00> : vector<16xf32>
    %51 = vector.multi_reduction <add>, %50, %cst_17 [1] : vector<16x16xf32> to vector<16xf32>
    %52 = vector.shape_cast %51 : vector<16xf32> to vector<16x1xf32>
    %53 = tpu.reciprocal %52 {approx = true} : vector<16x1xf32> -> vector<16x1xf32>
    %cst_18 = arith.constant dense<0.000000e+00> : vector<16x8xf32>
    %54 = tpu.matmul %50, %44, %cst_18 {dimension_numbers = #tpu.dot_dimension_numbers<[1], [0], [0], [1], [0, 0, 1, 1], [], []>} : vector<16x16xf32>, vector<16x8xf32>, vector<16x8xf32> -> vector<16x8xf32>
    %55 = vector.broadcast %53 : vector<16x1xf32> to vector<16x8xf32>
    %56 = arith.mulf %54, %55 : vector<16x8xf32>
    %57 = vector.extract_strided_slice %9 {offsets = [0, 24], sizes = [16, 8], strides = [1, 1]} : vector<16x32xf32> to vector<16x8xf32>
    %58 = vector.extract_strided_slice %10 {offsets = [0, 24], sizes = [16, 8], strides = [1, 1]} : vector<16x32xf32> to vector<16x8xf32>
    %59 = vector.extract_strided_slice %11 {offsets = [0, 24], sizes = [16, 8], strides = [1, 1]} : vector<16x32xf32> to vector<16x8xf32>
    %cst_19 = arith.constant dense<0.000000e+00> : vector<16x16xf32>
    %60 = tpu.matmul %57, %58, %cst_19 {dimension_numbers = #tpu.dot_dimension_numbers<[1], [1], [0], [0], [0, 0, 1, 0], [], []>} : vector<16x8xf32>, vector<16x8xf32>, vector<16x16xf32> -> vector<16x16xf32>
    %cst_20 = arith.constant dense<0xFF800000> : vector<16xf32>
    %61 = vector.multi_reduction <maximumf>, %60, %cst_20 [1] : vector<16x16xf32> to vector<16xf32>
    %62 = vector.shape_cast %61 : vector<16xf32> to vector<16x1xf32>
    %63 = vector.broadcast %62 : vector<16x1xf32> to vector<16x16xf32>
    %64 = arith.subf %60, %63 : vector<16x16xf32>
    %65 = math.exp %64 : vector<16x16xf32>
    %cst_21 = arith.constant dense<0.000000e+00> : vector<16xf32>
    %66 = vector.multi_reduction <add>, %65, %cst_21 [1] : vector<16x16xf32> to vector<16xf32>
    %67 = vector.shape_cast %66 : vector<16xf32> to vector<16x1xf32>
    %68 = tpu.reciprocal %67 {approx = true} : vector<16x1xf32> -> vector<16x1xf32>
    %cst_22 = arith.constant dense<0.000000e+00> : vector<16x8xf32>
    %69 = tpu.matmul %65, %59, %cst_22 {dimension_numbers = #tpu.dot_dimension_numbers<[1], [0], [0], [1], [0, 0, 1, 1], [], []>} : vector<16x16xf32>, vector<16x8xf32>, vector<16x8xf32> -> vector<16x8xf32>
    %70 = vector.broadcast %68 : vector<16x1xf32> to vector<16x8xf32>
    %71 = arith.mulf %69, %70 : vector<16x8xf32>
    %72 = tpu.concatenate %26, %41, %56, %71 in 1 : vector<16x8xf32>, vector<16x8xf32>, vector<16x8xf32>, vector<16x8xf32> -> vector<16x32xf32>
    %c0_23 = arith.constant 0 : index
    %c0_24 = arith.constant 0 : index
    %73 = vector.load %arg4[%c0_23, %c0_24] : memref<32x32xf32, #tpu.memory_space<vmem>>, vector<32x32xf32>
    %cst_25 = arith.constant dense<0.000000e+00> : vector<16x32xf32>
    %74 = tpu.matmul %72, %73, %cst_25 {dimension_numbers = #tpu.dot_dimension_numbers<[1], [0], [0], [1], [0, 0, 1, 1], [], []>} : vector<16x32xf32>, vector<32x32xf32>, vector<16x32xf32> -> vector<16x32xf32>
    %c0_26 = arith.constant 0 : index
    %c0_27 = arith.constant 0 : index
    %75 = vector.load %arg5[%c0_26, %c0_27] : memref<1x32xf32, #tpu.memory_space<vmem>>, vector<1x32xf32>
    %76 = vector.broadcast %75 : vector<1x32xf32> to vector<16x32xf32>
    %77 = arith.addf %74, %76 : vector<16x32xf32>
    %c0_28 = arith.constant 0 : index
    %c0_29 = arith.constant 0 : index
    %c0_30 = arith.constant 0 : index
    %78 = vector.load %arg6[%c0_28, %c0_29, %c0_30] : memref<1x16x32xf32, #tpu.memory_space<vmem>>, vector<1x16x32xf32>
    %79 = vector.shape_cast %78 : vector<1x16x32xf32> to vector<16x32xf32>
    %80 = vector.shape_cast %77 : vector<16x32xf32> to vector<1x16x32xf32>
    tpu.vector_store %arg6[%c0_28, %c0_29, %c0_30], %80 {strides = array<i32>} : memref<1x16x32xf32, #tpu.memory_space<vmem>>, vector<1x16x32xf32>,
    return
  }
  func.func @transform_0(%arg0: i32) -> (i32, i32, i32) {
    %c0_i32 = arith.constant 0 : i32
    %c0_i32_0 = arith.constant 0 : i32
    %c0_i32_1 = arith.constant 0 : i32
    return %arg0, %c0_i32, %c0_i32_0 : i32, i32, i32
  }
  func.func @transform_1(%arg0: i32) -> (i32, i32) {
    %c0_i32 = arith.constant 0 : i32
    %c0_i32_0 = arith.constant 0 : i32
    %c0_i32_1 = arith.constant 0 : i32
    return %c0_i32, %c0_i32_0 : i32, i32
  }
  func.func @transform_2(%arg0: i32) -> (i32, i32) {
    %c0_i32 = arith.constant 0 : i32
    %c0_i32_0 = arith.constant 0 : i32
    %c0_i32_1 = arith.constant 0 : i32
    return %c0_i32, %c0_i32_0 : i32, i32
  }
  func.func @transform_3(%arg0: i32) -> (i32, i32) {
    %c0_i32 = arith.constant 0 : i32
    %c0_i32_0 = arith.constant 0 : i32
    %c0_i32_1 = arith.constant 0 : i32
    return %c0_i32, %c0_i32_0 : i32, i32
  }
  func.func @transform_4(%arg0: i32) -> (i32, i32) {
    %c0_i32 = arith.constant 0 : i32
    %c0_i32_0 = arith.constant 0 : i32
    %c0_i32_1 = arith.constant 0 : i32
    return %c0_i32, %c0_i32_0 : i32, i32
  }
  func.func @transform_5(%arg0: i32) -> (i32, i32, i32) {
    %c0_i32 = arith.constant 0 : i32
    %c0_i32_0 = arith.constant 0 : i32
    %c0_i32_1 = arith.constant 0 : i32
    return %arg0, %c0_i32, %c0_i32_0 : i32, i32, i32
  }
}

</mosaic_0001>

<bundles_post_ra>
// kernel: tpu_custom_call.1
= control target key start
LH: loop header
LB: loop body
LE: loop exit
PB: predicated region body
PF: predicated region fallthrough
CT: control target
= control target key end

     0   :  { %10 = vsyncpa [#allocation3], 0  ;;  %s1519_s0 = inlined_call_operand.hbm [shape: f32[2,16,32], index: 0, kind: input, shape index: {}]   ;;  %s1520_s1 = inlined_call_operand.hbm [shape: f32[32,96], index: 1, kind: input, shape index: {}]   ;;  %s1521_s2 = inlined_call_operand.vmem [shape: f32[1,96], index: 2, kind: input, shape index: {}]   ;;  %s1522_s3 = inlined_call_operand.hbm [shape: f32[32,32], index: 3, kind: input, shape index: {}]   ;;  %s1523_s4 = inlined_call_operand.vmem [shape: f32[1,32], index: 4, kind: input, shape index: {}]   ;;  %s1524_s5 = inlined_call_operand.hbm [shape: f32[2,16,32], index: 5, kind: output, shape index: {}]  }
   0x1   :  { %12 = vsyncpa [#allocation3 + $0x1], 0 }
   0x2   :  { %13 = vsyncpa [#allocation6], 0 }
   0x3   :  { %14 = vsyncpa [#allocation4], 0 }
   0x4   :  { %16 = vsyncpa [#allocation4 + $0x1], 0  ;;  %s1287_s18 = smov 0   ;;  %s1289_s19 = smov 0  }
   0x5   :  { %s1291_s20 = smov 0   ;;  %s1293_s21 = smov 0  }
   0x6 LB: > { %s1308_s22 = sadd.s32 4294967295, %s1236_s21   ;;  %s884_s23 = sadd.s32 4294967294, %s1236_s21   ;;  %s1236_s21 = sphi %s1293_s21, %s1536_s21   ;;  %s1232_s20 = sphi %s1291_s20, %s1535_s20   ;;  %s1228_s19 = sphi %s1289_s19, %s1534_s19   ;;  %s1224_s18 = sphi %s1287_s18, %s1533_s18  }
   0x7   : > { %p42_p0 = scmp.ne.s32.totalorder %s1228_s19, %s1224_s18  ;;  %p43_p1 = scmp.eq.s32.totalorder %s1308_s22, 0 }
   0x8   : > { %p150_p2 = scmp.eq.s32.totalorder %s1308_s22, 1  ;;  %p156_p3 = scmp.eq.s32.totalorder %s884_s23, 1 }
   0x9   : > { %p1317_p4 = por %p43_p1, %p42_p0  ;;  %p885_p5 = scmp.ge.s32.totalorder %s1236_s21, 1 }
   0xa   : > { %p1322_p6 = por %p156_p3, %p42_p0  ;;  %p163_p7 = scmp.lt.s32.totalorder %s1236_s21, 3 }
   0xb   : > { %s174_s28 = sshll.u32 %s1520_s1, 4  ;;  %s1238_s30 = smov [#allocation5]   ;;  %s175_s28 = int_to_ptr.hbm [resolvable:$true] %s174_s28 }
   0xc   : > { %p1330_p8 = pnand %p885_p5, %p163_p7  ;;  %s176_s6 = sshll.u32 %s1238_s30, 4  ;;  %s177_s6 = int_to_ptr.vmem [resolvable:$true] %s176_s6 }
   0xd   : > { %s191_s9 = sshll.u32 %s1522_s3, 4  ;;  %s1525_s10 = smov 128   ;;  %s192_s9 = int_to_ptr.hbm [resolvable:$true] %s191_s9 }
   0xe   : > { %p950_p9 = pneg %p1330_p8  ;;  %s1240_s11 = smov 8  }
   0xf   : > { %s1241_s12 = smov [#allocation7]   ;;  %s1349_s14 = sadd.s32 1, %s1236_s21  }
  0x10   : > { %p951_p10 = pnand %p950_p9, %p43_p1  ;;  %s193_s13 = sshll.u32 %s1241_s12, 4  ;;  %s194_s13 = int_to_ptr.vmem [resolvable:$true] %s193_s13 }
  0x11   : > { %s29_s15 = sadd.s32 1, %s1232_s20  ;;  %s26_s16 = ssub.s32 %s1236_s21, %s1349_s14 }
  0x12   : > { %953 = dma.hbm_to_vmem [thread:$0]  (!%p951_p10), %s175_s28, 512, %s177_s6, [#allocation6], %s1525_s10, %s1525_s10, %s1240_s11  }
  0x13   : > { %956 = dma.hbm_to_vmem [thread:$0]  (!%p951_p10), %s192_s9, 512, %s194_s13, [#allocation6], %s1525_s10, %s1525_s10, %s1240_s11  }
  0x14   : > { %p36_p12 = scmp.ne.s32.totalorder %s1232_s20, %s1228_s19  ;;  %p27_p13 = scmp.eq.s32.totalorder %s26_s16, 0 }
  0x15   : > { %p37_p0 = scmp.eq.s32.totalorder %s1236_s21, 0  ;;  %p967_p5 = scmp.lt.s32.totalorder %s1236_s21, 2 }
  0x16   : > { %p1359_p3 = por %p150_p2, %p36_p12  ;;  %s210_s26 = sand.u32 1, %s1232_s20  }
  0x17   : > { %s1365_s23 = scalar_select %p27_p13, %s1232_s20, %s29_s15  }
  0x18   : > { %p38_p7 = por %p37_p0, %p36_p12  ;;  %s889_s27 = sshll.u32 %s210_s26, 4 }
  0x19   : > { %s930_s28 = sshll.u32 %s1236_s21, 4  ;;  %s214_s8 = scalar_lea.vmem [#allocation2], %s889_s27 }
  0x1a   : > { %s219_s7 = scalar_lea.hbm %s1519_s0, %s930_s28  ;;  %s222_s9 = sshll.u32 %s214_s8, 4  ;;  %s223_s9 = int_to_ptr.vmem [resolvable:$true] %s222_s9 }
  0x1b   : > { %s220_s12 = sshll.u32 %s219_s7, 4  ;;  %p1372_p2 = pnand %p967_p5, %p38_p7  ;;  %s221_s12 = int_to_ptr.hbm [resolvable:$true] %s220_s12 }
  0x1c   : > { %s211_s15 = scalar_lea.sflag [#allocation3], %s210_s26  ;;  %s1136_s16 = sshra.s32 %s221_s12, 4  ;;  %s1137_s16 = int_to_ptr.hbm [resolvable:$true] %s1136_s16 }
  0x1d   : > { %s1138_s10 = scalar_lea.hbm %s1137_s16, 16  ;;  %p1140_p10 = pneg %p1372_p2 }
  0x1e   : > { %p1139_p9 = scmp.ne.s32.totalorder %s1137_s16, %s1138_s10  ;;  %s1143_s30 = scalar_lea.hbm %s1519_s0, 32 }
  0x1f   : > { %p1144_p0 = scmp.lt.s32.totalorder %s1137_s16, %s1519_s0  ;;  %p1145_p5 = scmp.lt.s32.totalorder %s1143_s30, %s1138_s10 }
  0x20   : > { %p1141_p12 = pnand %p1140_p10, %p1139_p9 }
  0x21   : > { %p1146_p7 = por %p1145_p5, %p1144_p0 }
  0x22   : > { %p1142_p13 = pneg %p1141_p12 }
  0x24   : > { %p1147_p11 = pnand %p1146_p7, %p1142_p13 }
  0x26   : > { %1150 = shalt.err (!%p1147_p11)
}
  0x27   : > { %s1531_s26 = smov 128   ;;  %234 = sbr.rel (%p1330_p8) target bundleno = 1295 (0x50f), region = 40 }
  0x28   : > { %960 = dma.hbm_to_vmem [thread:$0]  (!%p1372_p2), %s221_s12, 256, %s223_s9, %s211_s15, %s1531_s26, %s1531_s26, %s1240_s11  }
  0x29   : > { %s1392_s8 = sand.u32 (!%p1330_p8), 1, %s1228_s19  }
  0x2a   : > { %s893_s10 = sshll.u32 (!%p1330_p8), %s1392_s8, 4  ;;  %s237_s16 = scalar_lea.sflag (!%p1330_p8), [#allocation3], %s1392_s8 }
  0x2b   : > { %s240_s28 = scalar_lea.vmem (!%p1330_p8), [#allocation2], %s893_s10 }
  0x2c   : > { %1211 = dma.done.wait (%p1317_p4), %s237_s16, 256  }
  0x2d   : > { %1213 = vsyncadd (%p1317_p4), %s237_s16, 4294967040 }
  0x2e   : > { %1215 = dma.done.wait (%p43_p1), [#allocation6], 1024  }
  0x2f   : > { %1217 = vsyncadd (%p43_p1), [#allocation6], 4294966272  ;;  %v283_v0 = vld [vmem:[#allocation5 + $0x18] sm:$0xff]  ;;  %v282_v1 = vld [vmem:[#allocation5 + $0x10] sm:$0xff]  ;;  %vm288_vm0 = vcmask 261120   ;;  %s1242_s11 = smov 88  }
  0x30   : > { %307 = vmatpush.msra.mxu0 %v283_v0  ;;  %932 = vmatpush.msra.mxu1 %v283_v0  ;;  %v281_v2 = vld [vmem:[#allocation5 + $0x8] sm:$0xff]  ;;  %v280_v3 = vld [vmem:[#allocation5] sm:$0xff]  ;;  %s1243_s9 = smov 96   ;;  %s1244_s12 = smov 120   ;;  %vm326_vm1 = vcmask 64512   ;;  %vm360_vm2 = vcmask 130048  }
  0x31   : > { %v278_v4 = vld [vmem:[%s240_s28] sm:$0xff]  ;;  %v279_v5 = vld [vmem:[%s240_s28 + $0x8] sm:$0xff]  ;;  %s1245_s13 = smov 72   ;;  %s1246_s15 = smov 80   ;;  %vm734_vm3 = vcmask 195584  }
  0x32   : > { %308 = vmatpush.msra.mxu0 %v282_v1  ;;  %933 = vmatpush.msra.mxu1 %v282_v1  ;;  %v1042_v6 = vld [vmem:[%s1521_s2] ss:$0 sm:$0xff]  ;;  %s1247_s27 = smov 104   ;;  %s1248_s30 = smov 112  }
  0x33   : > { %s1249_s6 = smov 56   ;;  %s1250_s7 = smov 64  }
  0x34   : > { %309 = vmatpush.msra.mxu0 %v281_v2  ;;  %934 = vmatpush.msra.mxu1 %v281_v2  ;;  %s1251_s26 = smov 48   ;;  %s1252_s16 = smov 40  }
  0x35   : > { %s1253_s28 = smov 16   ;;  %s1254_s24 = smov 8  }
  0x36   : > { %310 = vmatpush.msra.mxu0 %v280_v3  ;;  %935 = vmatpush.msra.mxu1 %v280_v3  ;;  %s1255_s29 = smov 24  }
  0x37   : > { %897 = vmatmul.msk.f32.vlgmr.msra.gmra.mxu0 %vm288_vm0, %v278_v4  ;;  %898 = vmatmul.msk.f32.vlgmr.msra.gmra.mxu1 %vm288_vm0, %v279_v5 }
  0xb4   : > { %v315_v7 = vpop.f32.mrf.mxu1  ;;  %v312_v9 = vpop.f32.mrf.mxu0 }
  0xb5   : > { %v316_v8 = vadd.f32 %v1042_v6, %v315_v7  ;;  %v313_v10 = vadd.f32 %v1042_v6, %v312_v9 }
  0xb7   : > { %424 = vrot.lane.b32.xlu2 %v316_v8, %s1242_s11  ;;  %324 = vrot.lane.b32.xlu0 %v316_v8, %s1243_s9  ;;  %v319_v11 = vmul.f32 0.35355338, %v316_v8  ;;  %v318_v12 = vmul.f32 0.35355338, %v313_v10  ;;  %v1412_v13 = vpack.i.bf16 %v313_v10, %v316_v8 }
  0xbf   : > { %422 = vrot.lane.b32.xlu2 %v313_v10, %s1242_s11  ;;  %322 = vrot.lane.b32.xlu0 %v313_v10, %s1243_s9 }
  0xc7   : > { %420 = vrot.lane.b32.xlu2 %v319_v11, %s1244_s12  ;;  %418 = vrot.lane.b32.xlu0 %v318_v12, %s1244_s12  ;;  %s931_s12 = sshll.u32 %s1308_s22, 4 }
  0xcf   : > { %614 = vrot.lane.b32.xlu2 %v313_v10, %s1245_s13  ;;  %616 = vrot.lane.b32.xlu0 %v316_v8, %s1245_s13  ;;  %s277_s13 = scalar_lea.vmem [#allocation8], %s893_s10 }
  0xd7   : > { %520 = vrot.lane.b32.xlu2 %v316_v8, %s1246_s15  ;;  %610 = vrot.lane.b32.xlu0 %v318_v12, %s1247_s27 }
  0xdf   : > { %514 = vrot.lane.b32.xlu2 %v318_v12, %s1248_s30  ;;  %612 = vrot.lane.b32.xlu0 %v319_v11, %s1247_s27 }
  0xe7   : > { %1028 = vrot.lane.b32.xlu2 %v1412_v13, %s1249_s6  ;;  %s789_s6 = sshll.u32 %s277_s13, 4  ;;  %s790_s6 = int_to_ptr.vmem [resolvable:$true] %s789_s6 }
 0x111   : > { %v425_v14 = vpop.permute.xlu2 %424 }
 0x119   : > { %v423_v15 = vpop.permute.xlu2 %422 }
 0x121   : > { %v421_v16 = vpop.permute.xlu2 %420 }
 0x129   : > { %v325_v17 = vpop.permute.xlu0 %324  ;;  %v615_v18 = vpop.permute.xlu2 %614 }
 0x12a   : > { %899 = vmatpush.xpose.msk.msrb.mxu1 %vm326_vm1, %v325_v17 }
 0x131   : > { %v521_v19 = vpop.permute.xlu2 %520  ;;  %v323_v20 = vpop.permute.xlu0 %322 }
 0x132   : > { %900 = vmatpush.xpose.msk.msrb.mxu1 %vm326_vm1, %v323_v20  ;;  %911 = vmatpush.xpose.msk.msrb.mxu0 %vm326_vm1, %v521_v19 }
 0x135   : > { %901 = vmatmul.msk.f32.vlgmr.msrb.gmra.mxu1 %vm326_vm1, %v318_v12 }
 0x139   : > { %v419_v25 = vpop.permute.xlu0 %418  ;;  %v515_v33 = vpop.permute.xlu2 %514 }
 0x13d   : > { %902 = vmatmul.msk.f32.gmra.mxu1 %vm326_vm1, %v319_v11 }
 0x141   : > { %v617_v26 = vpop.permute.xlu0 %616  ;;  %v1029_v38 = vpop.permute.xlu2 %1028 }
 0x142   : > { %v1030_v42 = vunpack.i.l.bf16 %v1029_v38  ;;  %v1031_v43 = vunpack.i.h.bf16 %v1029_v38 }
 0x149   : > { %v611_v27 = vpop.permute.xlu0 %610 }
 0x151   : > { %v613_v28 = vpop.permute.xlu0 %612 }
 0x1b2   : > { %v354_v21 = vpop.f32.mrf.mxu1 }
 0x1b3   : > { %v361_v22 = vsel %vm360_vm2, %v354_v21, -inf }
 0x1b4   : > { %362 = vmax.xlane.f32.xlu0 %v361_v22 }
 0x1ba   : > { %v357_v23 = vpop.f32.mrf.mxu1 }
 0x1bb   : > { %v364_v24 = vsel %vm360_vm2, %v357_v23, -inf }
 0x1bc   : > { %365 = vmax.xlane.f32.xlu1 %v364_v24 }
 0x1d5   : > { %1023 = vrot.lane.b32.xlu1 %v1412_v13, %s1250_s7 }
 0x1dd   : > { %518 = vrot.lane.b32.xlu1 %v313_v10, %s1246_s15 }
 0x1e5   : > { %516 = vrot.lane.b32.xlu1 %v319_v11, %s1248_s30  ;;  %s788_s30 = scalar_lea.hbm %s1524_s5, %s931_s12 }
 0x1e6   : > { %s791_s7 = sshll.u32 %s788_s30, 4  ;;  %s792_s7 = int_to_ptr.hbm [resolvable:$true] %s791_s7 }
 0x1e7   : > { %s1180_s22 = sshra.s32 %s792_s7, 4  ;;  %s1181_s22 = int_to_ptr.hbm [resolvable:$true] %s1180_s22 }
 0x1e8   : > { %p1187_p11 = scmp.lt.s32.totalorder %s1181_s22, %s1524_s5 }
 0x227   : > { %v363_v29 = vpop.xlane.xlu0 %362 }
 0x228   : > { %v367_v31 = vsub.f32 %v354_v21, %v363_v29 }
 0x22a   : > { %v369_v34 = vmul.f32 1.442695, %v367_v31 }
 0x22c   : > { %1044 = vpow2.f32 %v369_v34 }
 0x22f   : > { %v366_v30 = vpop.xlane.xlu1 %365 }
 0x230   : > { %v368_v32 = vsub.f32 %v357_v23, %v366_v30 }
 0x232   : > { %v371_v35 = vmul.f32 1.442695, %v368_v32  ;;  %v1424_v40 = vpop.eup %1044 }
 0x233   : > { %v373_v29 = vsel %vm360_vm2, %v1424_v40, 0.0 }
 0x234   : > { %1046 = vpow2.f32 %v371_v35 }
 0x23a   : > { %v1426_v41 = vpop.eup %1046 }
 0x23b   : > { %v376_v30 = vsel %vm360_vm2, %v1426_v41, 0.0 }
 0x247   : > { %v1024_v36 = vpop.permute.xlu1 %1023 }
 0x248   : > { %v1025_v37 = vunpack.i.l.bf16 %v1024_v36  ;;  %v1026_v39 = vunpack.i.h.bf16 %v1024_v36 }
 0x24a   : > { %407 = vmatpush.msra.mxu2 %v1025_v37  ;;  %936 = vmatpush.msra.mxu3 %v1025_v37 }
 0x24c   : > { %408 = vmatpush.msra.mxu2 %v1026_v39  ;;  %937 = vmatpush.msra.mxu3 %v1026_v39 }
 0x24d   : > { %903 = vmatmul.msk.f32.vlgmr.msra.gmra.mxu2 %vm360_vm2, %v1424_v40  ;;  %904 = vmatmul.msk.f32.vlgmr.msra.gmra.mxu3 %vm360_vm2, %v1426_v41 }
 0x24e   : > { %905 = vmatpush.xpose.msk.msrb.mxu3 %vm326_vm1, %v425_v14  ;;  %503 = vmatpush.msrb.mxu2 %v1030_v42 }
 0x24f   : > { %v519_v44 = vpop.permute.xlu1 %518 }
 0x250   : > { %504 = vmatpush.msrb.mxu2 %v1031_v43  ;;  %912 = vmatpush.xpose.msk.msrb.mxu0 %vm326_vm1, %v519_v44 }
 0x252   : > { %906 = vmatpush.xpose.msk.msrb.mxu3 %vm326_vm1, %v423_v15 }
 0x253   : > { %913 = vmatmul.msk.f32.vlgmr.msrb.gmra.mxu0 %vm326_vm1, %v515_v33 }
 0x255   : > { %907 = vmatmul.msk.f32.vlgmr.msrb.gmra.mxu3 %vm326_vm1, %v419_v25 }
 0x256   : > { %917 = vmatpush.xpose.msk.msra.mxu3 %vm326_vm1, %v617_v26 }
 0x257   : > { %v517_v45 = vpop.permute.xlu1 %516 }
 0x25a   : > { %918 = vmatpush.xpose.msk.msra.mxu3 %vm326_vm1, %v615_v18 }
 0x25b   : > { %914 = vmatmul.msk.f32.gmra.mxu0 %vm326_vm1, %v517_v45 }
 0x25d   : > { %908 = vmatmul.msk.f32.gmra.mxu3 %vm326_vm1, %v421_v16 }
 0x265   : > { %919 = vmatmul.msk.f32.vlgmr.msra.gmra.mxu3 %vm326_vm1, %v611_v27 }
 0x26d   : > { %920 = vmatmul.msk.f32.gmra.mxu3 %vm326_vm1, %v613_v28 }
 0x2d0   : > { %v1443_v46 = vpop.f32.mrf.mxu3  ;;  %v547_v47 = vpop.f32.mrf.mxu0 }
 0x2d1   : > { %v553_v48 = vsel %vm360_vm2, %v547_v47, -inf  ;;  %v410_v35 = vpop.f32.mrf.mxu2 }
 0x2d2   : > { %554 = vmax.xlane.f32.xlu1 %v553_v48 }
 0x2d8   : > { %v451_v49 = vpop.f32.mrf.mxu3  ;;  %v550_v57 = vpop.f32.mrf.mxu0 }
 0x2d9   : > { %v457_v50 = vsel %vm360_vm2, %v451_v49, -inf  ;;  %v556_v58 = vsel %vm360_vm2, %v550_v57, -inf }
 0x2da   : > { %458 = vmax.xlane.f32.xlu2 %v457_v50 }
 0x2e0   : > { %v454_v51 = vpop.f32.mrf.mxu3 }
 0x2e1   : > { %v460_v52 = vsel %vm360_vm2, %v454_v51, -inf }
 0x2e2   : > { %461 = vmax.xlane.f32.xlu1 %v460_v52 }
 0x2e8   : > { %v643_v53 = vpop.f32.mrf.mxu3 }
 0x2e9   : > { %v649_v54 = vsel %vm360_vm2, %v643_v53, -inf }
 0x2ea   : > { %650 = vmax.xlane.f32.xlu0 %v649_v54 }
 0x2f0   : > { %v646_v55 = vpop.f32.mrf.mxu3 }
 0x2f1   : > { %v652_v56 = vsel %vm360_vm2, %v646_v55, -inf }
 0x2f2   : > { %1038 = vrot.lane.b32.xlu2 %v1412_v13, %s1251_s26  ;;  %653 = vmax.xlane.f32.xlu0 %v652_v56  ;;  %s777_s26 = scalar_lea.sflag [#allocation4], %s1392_s8 }
 0x2fa   : > { %557 = vmax.xlane.f32.xlu0 %v556_v58 }
 0x2fb   : > { %1033 = vrot.lane.b32.xlu1 %v1412_v13, %s1252_s16  ;;  %s1182_s16 = scalar_lea.hbm %s1181_s22, 16 }
 0x2fc   : > { %p1183_p1 = scmp.ne.s32.totalorder %s1181_s22, %s1182_s16 }
 0x2fe   : > { %p1184_p4 = pnand %p1183_p1, %p1359_p3 }
 0x300   : > { %p1185_p8 = pneg %p1184_p4 }
 0x345   : > { %v555_v59 = vpop.xlane.xlu1 %554 }
 0x346   : > { %v559_v60 = vsub.f32 %v547_v47, %v555_v59 }
 0x348   : > { %v561_v61 = vmul.f32 1.442695, %v559_v60 }
 0x34a   : > { %1048 = vpow2.f32 %v561_v61 }
 0x34d   : > { %v459_v62 = vpop.xlane.xlu2 %458 }
 0x34e   : > { %v463_v63 = vsub.f32 %v451_v49, %v459_v62 }
 0x350   : > { %v465_v0 = vmul.f32 1.442695, %v463_v63  ;;  %v1049_v1 = vpop.eup %1048  ;;  %v740_v63 = vld [vmem:[#allocation7 + $0x18] sm:$0xff] }
 0x351   : > { %v565_v2 = vsel %vm360_vm2, %v1049_v1, 0.0  ;;  %763 = vmatpush.msra.mxu0 %v740_v63 }
 0x352   : > { %1050 = vpow2.f32 %v465_v0  ;;  %566 = vadd.xlane.f32.xlu2 %v565_v2  ;;  %v739_v0 = vld [vmem:[#allocation7 + $0x10] sm:$0xff]  ;;  %v737_v2 = vld [vmem:[#allocation7] sm:$0xff] }
 0x353   : > { %764 = vmatpush.msra.mxu0 %v739_v0 }
 0x355   : > { %v1039_v3 = vpop.permute.xlu2 %1038  ;;  %v462_v4 = vpop.xlane.xlu1 %461 }
 0x356   : > { %v1040_v5 = vunpack.i.l.bf16 %v1039_v3  ;;  %v464_v6 = vsub.f32 %v454_v51, %v462_v4  ;;  %v1041_v8 = vunpack.i.h.bf16 %v1039_v3 }
 0x358   : > { %v1051_v7 = vpop.eup %1050  ;;  %v467_v9 = vmul.f32 1.442695, %v464_v6  ;;  %599 = vmatpush.msra.mxu1 %v1040_v5 }
 0x359   : > { %909 = vmatmul.msk.f32.vlgmr.msrb.gmra.mxu2 %vm360_vm2, %v1051_v7  ;;  %v469_v10 = vsel %vm360_vm2, %v1051_v7, 0.0 }
 0x35a   : > { %1052 = vpow2.f32 %v467_v9  ;;  %600 = vmatpush.msra.mxu1 %v1041_v8  ;;  %470 = vadd.xlane.f32.xlu0 %v469_v10 }
 0x35b   : > { %915 = vmatmul.msk.f32.vlgmr.msra.gmra.mxu1 %vm360_vm2, %v1049_v1  ;;  %v738_v1 = vld [vmem:[#allocation7 + $0x8] sm:$0xff] }
 0x35c   : > { %765 = vmatpush.msra.mxu0 %v738_v1 }
 0x35d   : > { %v651_v11 = vpop.xlane.xlu0 %650 }
 0x35e   : > { %v655_v14 = vsub.f32 %v643_v53, %v651_v11  ;;  %766 = vmatpush.msra.mxu0 %v737_v2 }
 0x360   : > { %v1053_v12 = vpop.eup %1052  ;;  %v657_v16 = vmul.f32 1.442695, %v655_v14 }
 0x361   : > { %910 = vmatmul.msk.f32.gmra.mxu2 %vm360_vm2, %v1053_v12  ;;  %v472_v13 = vsel %vm360_vm2, %v1053_v12, 0.0 }
 0x362   : > { %473 = vadd.xlane.f32.xlu1 %v472_v13  ;;  %1054 = vpow2.f32 %v657_v16 }
 0x365   : > { %v654_v15 = vpop.xlane.xlu0 %653 }
 0x366   : > { %v656_v17 = vsub.f32 %v646_v55, %v654_v15 }
 0x368   : > { %v659_v22 = vmul.f32 1.442695, %v656_v17  ;;  %v1055_v25 = vpop.eup %1054  ;;  %v1043_v17 = vld [vmem:[%s1523_s4] ss:$0 sm:$0xff] }
 0x369   : > { %v661_v31 = vsel %vm360_vm2, %v1055_v25, 0.0 }
 0x36d   : > { %v558_v18 = vpop.xlane.xlu0 %557  ;;  %v1034_v19 = vpop.permute.xlu1 %1033 }
 0x36e   : > { %v560_v20 = vsub.f32 %v550_v57, %v558_v18  ;;  %v1035_v21 = vunpack.i.l.bf16 %v1034_v19  ;;  %v1036_v24 = vunpack.i.h.bf16 %v1034_v19 }
 0x370   : > { %v563_v23 = vmul.f32 1.442695, %v560_v20  ;;  %695 = vmatpush.msra.mxu2 %v1035_v21 }
 0x372   : > { %1056 = vpow2.f32 %v563_v23  ;;  %696 = vmatpush.msra.mxu2 %v1036_v24 }
 0x373   : > { %921 = vmatmul.msk.f32.vlgmr.msra.gmra.mxu2 %vm360_vm2, %v1055_v25  ;;  %1058 = vpow2.f32 %v659_v22 }
 0x378   : > { %v1057_v26 = vpop.eup %1056 }
 0x379   : > { %916 = vmatmul.msk.f32.gmra.mxu1 %vm360_vm2, %v1057_v26  ;;  %v568_v27 = vsel %vm360_vm2, %v1057_v26, 0.0  ;;  %v1059_v28 = vpop.eup %1058 }
 0x37a   : > { %569 = vadd.xlane.f32.xlu0 %v568_v27  ;;  %v664_v32 = vsel %vm360_vm2, %v1059_v28, 0.0 }
 0x37b   : > { %922 = vmatmul.msk.f32.gmra.mxu2 %vm360_vm2, %v1059_v28 }
 0x382   : > { %374 = vadd.xlane.f32.xlu0 %v373_v29 }
 0x38a   : > { %377 = vadd.xlane.f32.xlu0 %v376_v30 }
 0x392   : > { %662 = vadd.xlane.f32.xlu0 %v661_v31 }
 0x39a   : > { %665 = vadd.xlane.f32.xlu0 %v664_v32 }
 0x3c5   : > { %v567_v33 = vpop.xlane.xlu2 %566 }
 0x3c6   : > { %1060 = vrcp.f32 %v567_v33 }
 0x3cc   : > { %v1061_v36 = vpop.eup %1060 }
 0x3cd   : > { %v471_v34 = vpop.xlane.xlu0 %470 }
 0x3ce   : > { %1062 = vrcp.f32 %v471_v34 }
 0x3d4   : > { %v1063_v40 = vpop.eup %1062 }
 0x3d5   : > { %v474_v39 = vpop.xlane.xlu1 %473 }
 0x3d6   : > { %1064 = vrcp.f32 %v474_v39 }
 0x3d8   : > { %v602_v37 = vpop.f32.mrf.mxu1 }
 0x3d9   : > { %v608_v38 = vmul.f32 %v1061_v36, %v602_v37 }
 0x3db   : > { %716 = vrot.lane.b32.xlu2 %v608_v38, %s1253_s28 }
 0x3dc   : > { %v506_v41 = vpop.f32.mrf.mxu2  ;;  %v1065_v43 = vpop.eup %1064 }
 0x3dd   : > { %v512_v42 = vmul.f32 %v1063_v40, %v506_v41 }
 0x3df   : > { %708 = vrot.lane.b32.xlu0 %v512_v42, %s1254_s24 }
 0x3e4   : > { %v509_v44 = vpop.f32.mrf.mxu2 }
 0x3e5   : > { %v513_v45 = vmul.f32 %v1065_v43, %v509_v44 }
 0x3e7   : > { %710 = vrot.lane.b32.xlu0 %v513_v45, %s1254_s24 }
 0x3ed   : > { %v570_v47 = vpop.xlane.xlu0 %569 }
 0x3ee   : > { %1066 = vrcp.f32 %v570_v47 }
 0x3f4   : > { %v1067_v49 = vpop.eup %1066 }
 0x3f5   : > { %v375_v48 = vpop.xlane.xlu0 %374 }
 0x3f6   : > { %1068 = vrcp.f32 %v375_v48  ;;  %v605_v50 = vpop.f32.mrf.mxu1  ;;  %v698_v56 = vpop.f32.mrf.mxu2 }
 0x3f7   : > { %v609_v51 = vmul.f32 %v1067_v49, %v605_v50 }
 0x3f9   : > { %718 = vrot.lane.b32.xlu2 %v609_v51, %s1253_s28 }
 0x3fc   : > { %v1069_v52 = vpop.eup %1068 }
 0x3fd   : > { %v378_v53 = vpop.xlane.xlu0 %377  ;;  %v416_v54 = vmul.f32 %v1069_v52, %v410_v35 }
 0x3fe   : > { %v701_v61 = vpop.f32.mrf.mxu2 }
 0x405   : > { %v663_v55 = vpop.xlane.xlu0 %662 }
 0x406   : > { %1070 = vrcp.f32 %v663_v55 }
 0x40c   : > { %v1071_v57 = vpop.eup %1070 }
 0x40d   : > { %v666_v58 = vpop.xlane.xlu0 %665  ;;  %v704_v59 = vmul.f32 %v1071_v57, %v698_v56 }
 0x40e   : > { %1072 = vrcp.f32 %v666_v58 }
 0x40f   : > { %724 = vrot.lane.b32.xlu1 %v704_v59, %s1255_s29  ;;  %1074 = vrcp.f32 %v378_v53 }
 0x414   : > { %v1073_v60 = vpop.eup %1072 }
 0x415   : > { %v705_v62 = vmul.f32 %v1073_v60, %v701_v61  ;;  %v1075_v6 = vpop.eup %1074 }
 0x416   : > { %v417_v11 = vmul.f32 %v1075_v6, %v1443_v46 }
 0x417   : > { %726 = vrot.lane.b32.xlu0 %v705_v62, %s1255_s29  ;;  %s1186_s29 = scalar_lea.hbm %s1524_s5, 32 }
 0x418   : > { %p1188_p2 = scmp.lt.s32.totalorder %s1186_s29, %s1182_s16 }
 0x41a   : > { %p1189_p9 = por %p1188_p2, %p1187_p11 }
 0x41c   : > { %p1190_p10 = pnand %p1189_p9, %p1185_p8 }
 0x435   : > { %v717_v5 = vpop.permute.xlu2 %716 }
 0x451   : > { %v709_v3 = vpop.permute.xlu0 %708 }
 0x452   : > { %v730_v4 = vsel %vm326_vm1, %v416_v54, %v709_v3 }
 0x453   : > { %v732_v9 = vsel %vm360_vm2, %v730_v4, %v717_v5  ;;  %v719_v13 = vpop.permute.xlu2 %718 }
 0x459   : > { %v711_v7 = vpop.permute.xlu0 %710 }
 0x45a   : > { %v731_v12 = vsel %vm326_vm1, %v417_v11, %v711_v7 }
 0x45b   : > { %v733_v15 = vsel %vm360_vm2, %v731_v12, %v719_v13 }
 0x481   : > { %v725_v8 = vpop.permute.xlu1 %724 }
 0x482   : > { %v735_v10 = vsel %vm734_vm3, %v732_v9, %v725_v8 }
 0x483   : > { %923 = vmatmul.msk.f32.vlgmr.msra.gmra.mxu0 %vm288_vm0, %v735_v10 }
 0x489   : > { %v727_v14 = vpop.permute.xlu0 %726 }
 0x48a   : > { %v736_v16 = vsel %vm734_vm3, %v733_v15, %v727_v14 }
 0x48b   : > { %924 = vmatmul.msk.f32.gmra.mxu0 %vm288_vm0, %v736_v16 }
 0x500   : > { %v768_v18 = vpop.f32.mrf.mxu0 }
 0x501   : > { %v769_v19 = vadd.f32 %v1043_v17, %v768_v18 }
 0x503   : > { %774 = vst.msk [vmem:[%s277_s13] sm:$0xff] %vm288_vm0, %v769_v19 }
 0x508   : > { %v771_v46 = vpop.f32.mrf.mxu0 }
 0x509   : > { %v772_v20 = vadd.f32 %v1043_v17, %v771_v46 }
 0x50b   : > { %775 = vst.msk [vmem:[%s277_s13 + $0x8] sm:$0xff] %vm288_vm0, %v772_v20 }
 0x50c   : > { %1193 = shalt.err (!%p1190_p10)
}
 0x50d   : > { %s1256_s8 = smov 128  }
 0x50e   : > { %948 = dma.vmem_to_hbm [thread:$0]  (%p1359_p3), %s790_s6, 256, %s792_s7, %s777_s26, %s1256_s8, %s1256_s8, %s1254_s24  }
 0x50f PF: > { %s806_s12 = sand.u32 1, %s1224_s18   ;;  %p1532_p12 = scmp.ge.s32.totalorder %s1236_s21, 2 }
 0x510   : > { %s807_s13 = scalar_lea.sflag [#allocation4], %s806_s12 }
 0x511   : > { %p962_p13 = pnand %p1532_p12, %p1322_p6 }
 0x513   : > { %p963_p0 = pneg %p962_p13 }
 0x515   : > { %1219 = dma.done.wait (%p963_p0), %s807_s13, 256  }
 0x516   : > { %1221 = vsyncadd (%p963_p0), %s807_s13, 4294967040  ;;  %p19_p5 = scmp.ge.s32.totalorder %s1349_s14, 4   ;;  %s1533_s18 = smov %s1228_s19 }
 0x517   : > { %s1534_s19 = smov %s1232_s20  ;;  %s1535_s20 = smov %s1365_s23 }
 0x518   : > { %s1536_s21 = smov %s1349_s14  ;;  %21 = sbr.rel (!%p19_p5) target bundleno = 6 (0x6), region = 93 }
 0x51d   :  { %813 = vsyncpa [#allocation3], 1 }
 0x51e   :  { %815 = vsyncpa [#allocation3 + $0x1], 1 }
 0x51f   :  { %816 = vsyncpa [#allocation6], 1 }
 0x520   :  { %817 = vsyncpa [#allocation4], 1 }
 0x521   :  { %819 = vsyncpa [#allocation4 + $0x1], 1 }

</bundles_post_ra>
